<compile_context>
chip_gen: v7x
topology: tpu7x:2x2x1
jax: 0.10.0
libtpu: 0.0.40
codegen_flags: <defaults>
</compile_context>

<pallas_src>
import math

import jax
import jax.numpy as jnp
from jax.experimental import pallas as pl
from jax.experimental.pallas import tpu as pltpu


def _pe_add_kernel(ph_ref, pw_ref, x_ref, o_ref):
    """o = x + PE, PE computed statelessly for this (Rb, H) tile.

    ph_ref, pw_ref : (Rb, 1) float32  -- per-row spatial positions (h, w)
    x_ref, o_ref   : (Rb, H)          -- H = d_model_hidden = 2 * d_model
    """
    H = x_ref.shape[-1]
    d_model = H // 2  # static Python int

    # Per-column metadata on a (1, H) row: only H exp() calls per grid step.
    j = jax.lax.broadcasted_iota(jnp.int32, (1, H), 1)            # (1, H)
    is_w = j >= d_model                                           # second half -> pe_w
    jj = jnp.where(is_w, j - d_model, j)                          # index inside pe_h / pe_w
    k = (jj >> 1).astype(jnp.float32)                             # div_term index (c // 2)
    div = jnp.exp(k * (-2.0 * math.log(10000.0) / float(d_model)))  # (1, H)
    is_odd = (jj & 1) == 1                                        # odd col -> cos, even -> sin

    pos = jnp.where(is_w, pw_ref[...], ph_ref[...])               # (Rb, H) via broadcast
    arg = pos * div                                               # (Rb, H)
    pe = jnp.where(is_odd, jnp.cos(arg), jnp.sin(arg))            # EUP work, free here

    o_ref[...] = x_ref[...] + pe.astype(o_ref.dtype)


def positional_encoding_spatial_custom(x, nonego_idx):
    """Forward pass of PositionalEncoding_spatial_custom (mode='plus', eval).

    x          : (B, N, H) float32, H == d_model_hidden (must be even)
    nonego_idx : tuple/list of two (N,) arrays (pos_h, pos_w)
    returns    : (B, N, H) float32
    """
    B, N, H = x.shape
    assert H % 2 == 0, "d_model_hidden must be even"
    rows = B * N

    # Expand positions across the batch so every row of the flattened x has its
    # own (pos_h, pos_w) pair.  Tiny: 2 * B * N floats.
    pos_h = jnp.asarray(nonego_idx[0], jnp.float32).reshape(1, N)
    pos_w = jnp.asarray(nonego_idx[1], jnp.float32).reshape(1, N)
    ph = jnp.broadcast_to(pos_h, (B, N)).reshape(rows, 1)
    pw = jnp.broadcast_to(pos_w, (B, N)).reshape(rows, 1)

    x2 = x.reshape(rows, H)  # contiguous reshape: free

    # Row-block size: ~2 MiB of x per block, multiple of 8 rows, capped at rows.
    # Double-buffered (x in + out + 2 pos cols) stays ~8.5 MiB << 32 MiB scoped
    # VMEM, which is safe on v5e / v6e (128 MiB phys) and v7x (64 MiB phys).
    row_bytes = H * x2.dtype.itemsize
    target_block_bytes = 2 * 1024 * 1024
    rb = max(8, (target_block_bytes // max(row_bytes, 1)) // 8 * 8)
    rb = min(rb, rows)  # if rb == rows it equals the full dim -> always legal
    grid = (pl.cdiv(rows, rb),)

    out_flat = pl.pallas_call(
        _pe_add_kernel,
        out_shape=jax.ShapeDtypeStruct((rows, H), x.dtype),
        grid_spec=pltpu.PrefetchScalarGridSpec(
            num_scalar_prefetch=0,
            grid=grid,
            in_specs=[
                pl.BlockSpec((rb, 1), lambda r: (r, 0)),   # pos_h column
                pl.BlockSpec((rb, 1), lambda r: (r, 0)),   # pos_w column
                pl.BlockSpec((rb, H), lambda r: (r, 0)),   # x row block (contiguous)
            ],
            out_specs=pl.BlockSpec((rb, H), lambda r: (r, 0)),
        ),
        compiler_params=pltpu.CompilerParams(
            dimension_semantics=("parallel",),             # stateless tiles: v7x-safe
            vmem_limit_bytes=32 * 1024 * 1024,
        ),
    )(ph, pw, x2)

    # TODO(synk): nn.Dropout is identity at inference; training-mode dropout not implemented.
    return out_flat.reshape(B, N, H)


def _reference(x, nonego_idx):
    """Pure-JAX reference matching the PyTorch forward (mode='plus', eval)."""
    B, N, H = x.shape
    d_model = H // 2
    pos_h = nonego_idx[0].astype(jnp.float32)[:, None]  # (N, 1)
    pos_w = nonego_idx[1].astype(jnp.float32)[:, None]
    div_term = jnp.exp(
        jnp.arange(0, d_model, 2, dtype=jnp.float32) * -(math.log(10000.0) / d_model)
    )
    pe_h = jnp.zeros((N, d_model), jnp.float32)
    pe_w = jnp.zeros((N, d_model), jnp.float32)
    pe_h = pe_h.at[:, 0::2].set(jnp.sin(pos_h * div_term))
    pe_h = pe_h.at[:, 1::2].set(jnp.cos(pos_h * div_term))
    pe_w = pe_w.at[:, 0::2].set(jnp.sin(pos_w * div_term))
    pe_w = pe_w.at[:, 1::2].set(jnp.cos(pos_w * div_term))
    pe = jnp.concatenate([pe_h, pe_w], axis=-1)[None].repeat(B, axis=0)
    return x + pe


if __name__ == "__main__":
    key = jax.random.PRNGKey(0)

    # Module hyper-params (small, consistent with the forward):
    d_model_hidden = 32          # -> d_model = 16, PE width = 32
    B, N, H = 2, 8, d_model_hidden

    k_x, k_h, k_w = jax.random.split(key, 3)
    x = jax.random.normal(k_x, (B, N, H), dtype=jnp.float32)
    pos_h = jax.random.randint(k_h, (N,), 0, 16, dtype=jnp.int32)
    pos_w = jax.random.randint(k_w, (N,), 0, 16, dtype=jnp.int32)
    nonego_idx = (pos_h, pos_w)

    out = positional_encoding_spatial_custom(x, nonego_idx)
    out = jax.block_until_ready(out)

    ref = _reference(x, nonego_idx)
    assert out.shape == ref.shape and out.dtype == ref.dtype
    assert jnp.allclose(out, ref, atol=1e-4, rtol=1e-4)

    print("KERNEL_OK")
</pallas_src>

<mosaic_0001>
module attributes {stable_mosaic.version = 11 : i64} {
  func.func @_pe_add_kernel(%arg0: i32, %arg1: memref<16x1xf32, #tpu.memory_space<vmem>>, %arg2: memref<16x1xf32, #tpu.memory_space<vmem>>, %arg3: memref<16x32xf32, #tpu.memory_space<vmem>>, %arg4: memref<16x32xf32, #tpu.memory_space<vmem>>) attributes {dimension_semantics = [#tpu.dimension_semantics<parallel>], iteration_bounds = array<i64: 1>, scalar_prefetch = 0 : i64, scratch_operands = 0 : i64, tpu.core_type = #tpu.core_type<tc>, window_params = [{transform_indices = @transform_0, window_bounds = array<i64: 16, 1>}, {transform_indices = @transform_1, window_bounds = array<i64: 16, 1>}, {transform_indices = @transform_2, window_bounds = array<i64: 16, 32>}, {transform_indices = @transform_3, window_bounds = array<i64: 16, 32>}]} {
    %0 = tpu.iota {dimensions = array<i32: 1>} : vector<1x32xi32>
    %c16_i32 = arith.constant 16 : i32
    %1 = vector.broadcast %c16_i32 : i32 to vector<1x32xi32>
    %2 = arith.cmpi sge, %0, %1 : vector<1x32xi32>
    %c16_i32_0 = arith.constant 16 : i32
    %3 = vector.broadcast %c16_i32_0 : i32 to vector<1x32xi32>
    %4 = arith.subi %0, %3 : vector<1x32xi32>
    %5 = arith.select %2, %4, %0 : vector<1x32xi1>, vector<1x32xi32>
    %c1_i32 = arith.constant 1 : i32
    %6 = vector.broadcast %c1_i32 : i32 to vector<1x32xi32>
    %7 = arith.shrsi %5, %6 : vector<1x32xi32>
    %8 = arith.sitofp %7 : vector<1x32xi32> to vector<1x32xf32>
    %cst = arith.constant -1.15129256 : f32
    %9 = vector.broadcast %cst : f32 to vector<1x32xf32>
    %10 = arith.mulf %8, %9 : vector<1x32xf32>
    %11 = math.exp %10 : vector<1x32xf32>
    %c1_i32_1 = arith.constant 1 : i32
    %12 = vector.broadcast %c1_i32_1 : i32 to vector<1x32xi32>
    %13 = arith.andi %5, %12 : vector<1x32xi32>
    %c1_i32_2 = arith.constant 1 : i32
    %14 = vector.broadcast %c1_i32_2 : i32 to vector<1x32xi32>
    %15 = arith.cmpi eq, %13, %14 : vector<1x32xi32>
    %c0 = arith.constant 0 : index
    %c0_3 = arith.constant 0 : index
    %16 = vector.load %arg2[%c0, %c0_3] : memref<16x1xf32, #tpu.memory_space<vmem>>, vector<16x1xf32>
    %c0_4 = arith.constant 0 : index
    %c0_5 = arith.constant 0 : index
    %17 = vector.load %arg1[%c0_4, %c0_5] : memref<16x1xf32, #tpu.memory_space<vmem>>, vector<16x1xf32>
    %18 = vector.shape_cast %2 : vector<1x32xi1> to vector<1x32xi1>
    %19 = vector.broadcast %18 : vector<1x32xi1> to vector<16x32xi1>
    %20 = vector.shape_cast %16 : vector<16x1xf32> to vector<16x1xf32>
    %21 = vector.broadcast %20 : vector<16x1xf32> to vector<16x32xf32>
    %22 = vector.shape_cast %17 : vector<16x1xf32> to vector<16x1xf32>
    %23 = vector.broadcast %22 : vector<16x1xf32> to vector<16x32xf32>
    %24 = arith.select %19, %21, %23 : vector<16x32xi1>, vector<16x32xf32>
    %25 = vector.broadcast %11 : vector<1x32xf32> to vector<16x32xf32>
    %26 = arith.mulf %24, %25 : vector<16x32xf32>
    %27 = math.cos %26 : vector<16x32xf32>
    %28 = math.sin %26 : vector<16x32xf32>
    %29 = vector.shape_cast %15 : vector<1x32xi1> to vector<1x32xi1>
    %30 = vector.broadcast %29 : vector<1x32xi1> to vector<16x32xi1>
    %31 = arith.select %30, %27, %28 : vector<16x32xi1>, vector<16x32xf32>
    %c0_6 = arith.constant 0 : index
    %c0_7 = arith.constant 0 : index
    %32 = vector.load %arg3[%c0_6, %c0_7] : memref<16x32xf32, #tpu.memory_space<vmem>>, vector<16x32xf32>
    %33 = arith.addf %32, %31 : vector<16x32xf32>
    %c0_8 = arith.constant 0 : index
    %c0_9 = arith.constant 0 : index
    %34 = vector.load %arg4[%c0_8, %c0_9] : memref<16x32xf32, #tpu.memory_space<vmem>>, vector<16x32xf32>
    tpu.vector_store %arg4[%c0_8, %c0_9], %33 {strides = array<i32>} : memref<16x32xf32, #tpu.memory_space<vmem>>, vector<16x32xf32>,
    return
  }
  func.func @transform_0(%arg0: i32) -> (i32, i32) {
    %c0_i32 = arith.constant 0 : i32
    %c0_i32_0 = arith.constant 0 : i32
    return %arg0, %c0_i32 : i32, i32
  }
  func.func @transform_1(%arg0: i32) -> (i32, i32) {
    %c0_i32 = arith.constant 0 : i32
    %c0_i32_0 = arith.constant 0 : i32
    return %arg0, %c0_i32 : i32, i32
  }
  func.func @transform_2(%arg0: i32) -> (i32, i32) {
    %c0_i32 = arith.constant 0 : i32
    %c0_i32_0 = arith.constant 0 : i32
    return %arg0, %c0_i32 : i32, i32
  }
  func.func @transform_3(%arg0: i32) -> (i32, i32) {
    %c0_i32 = arith.constant 0 : i32
    %c0_i32_0 = arith.constant 0 : i32
    return %arg0, %c0_i32 : i32, i32
  }
}

</mosaic_0001>

<bundles_post_ra>
// kernel: tpu_custom_call.1
= control target key start
LH: loop header
LB: loop body
LE: loop exit
PB: predicated region body
PF: predicated region fallthrough
CT: control target
= control target key end

     0   :  { %v569_v2 = vmov 0   ;;  %s706_s0 = inlined_call_operand.vmem [shape: f32[16,1], index: 0, kind: input, shape index: {}]   ;;  %s707_s1 = inlined_call_operand.vmem [shape: f32[16,1], index: 1, kind: input, shape index: {}]   ;;  %s708_s2 = inlined_call_operand.vmem [shape: f32[16,32], index: 2, kind: input, shape index: {}]   ;;  %s709_s3 = inlined_call_operand.hbm [shape: f32[16,32], index: 3, kind: output, shape index: {}]  }
   0x1   :  { %v29_v0 = vld [vmem:[%s706_s0] sm:$0xff]  ;;  %534 = vset.pattern.permute.xlu1 %v569_v2  ;;  %533 = vset.pattern.permute.xlu0 %v569_v2  ;;  %v30_v3 = vld [vmem:[%s706_s0 + $0x8] sm:$0xff] }
   0x2   :  { %v27_v1 = vld [vmem:[%s707_s1] sm:$0xff]  ;;  %45 = vperm.xlu1 %534, %v29_v0   ;;  %v28_v4 = vld [vmem:[%s707_s1 + $0x8] sm:$0xff] }
   0x3   :  { %35 = vperm.xlu0 %533, %v27_v1  }
   0x4   :  { %8 = vsyncpa [#allocation3], 0  ;;  %v15_v5 = vlaneseq  ;;  %v570_v38 = vmov 683565275   ;;  %v571_v42 = vmov 2475754826  }
   0x5   :  { %v572_v44 = vmov 2131351028   ;;  %v573_v46 = vmov 2102212464   ;;  %v574_v48 = vmov 920167782  }
   0x6   :  { %50 = vperm.xlu1 %534, %v30_v3   ;;  %v16_v6 = vand.u32 127, %v15_v5  ;;  %v575_v55 = vmov 1326507024   ;;  %s576_s22 = smov [#allocation2]  }
   0x7   :  { %40 = vperm.xlu0 %533, %v28_v4   ;;  %s487_s23 = sshll.u32 %s576_s22, 4  ;;  %s488_s23 = int_to_ptr.vmem [resolvable:$true] %s487_s23 }
   0x8   :  { %v498_v7 = vadd.s32 4294967280, %v16_v6  ;;  %vm17_vm0 = vcmp.ge.s32.totalorder %v16_v6, 16  ;;  %s545_s24 = scalar_lea.vmem %s488_s23, 256  ;;  %p550_p1 = scmp.lt.s32.totalorder %s488_s23, %s488_s23 }
   0x9   :  { %p546_p0 = scmp.ne.s32.totalorder %s488_s23, %s545_s24  ;;  %p551_p2 = scmp.lt.s32.totalorder %s545_s24, %s545_s24 }
   0xa   :  { %v612_v8 = vsel %vm17_vm0, %v498_v7, %v16_v6 }
   0xb   :  { %v20_v9 = vshra.s32 %v612_v8, 1  ;;  %p552_p3 = por %p551_p2, %p550_p1 }
   0xd   :  { %v21_v10 = vcvt.s32.f32 %v20_v9  ;;  %p553_p4 = pnand %p552_p3, %p546_p0 }
   0xf   :  { %v22_v11 = vmul.f32 -1.1512926, %v21_v10 }
  0x11   :  { %v23_v12 = vmul.f32 1.442695, %v22_v11 }
  0x13   :  { %535 = vpow2.f32 %v23_v12 }
  0x1d   :  { %v536_v13 = vpop.eup %535 }
  0x81   :  { %v46_v14 = vpop.permute.xlu1 %45 }
  0x82   :  { %v36_v15 = vpop.permute.xlu0 %35 }
  0x83   :  { %v53_v16 = vsel %vm17_vm0, %v36_v15, %v46_v14 }
  0x84   :  { %v616_v17 = vmul.f32 %v536_v13, %v53_v16 }
  0x85   :  { %v51_v20 = vpop.permute.xlu1 %50 }
  0x86   :  { %v57_v18 = vand.u32 2147483647, %v616_v17  ;;  %v60_v19 = vand.u32 2139095040, %v616_v17  ;;  %v41_v21 = vpop.permute.xlu0 %40  ;;  %vm59_vm15 = vcmp.lt.s32.totalorder %v616_v17, 0 }
  0x87   :  { %v54_v22 = vsel %vm17_vm0, %v41_v21, %v51_v20 }
  0x88   :  { %v61_v23 = vshrl.u32 %v60_v19, 23  ;;  %v621_v24 = vmul.f32 %v536_v13, %v54_v22  ;;  %v64_v25 = vand.u32 8388607, %v57_v18  ;;  %vm58_vm0 = vcmp.le.f32.partialorder %v57_v18, 0.7853982 }
  0x8a   :  { %v499_v26 = vadd.s32 4294967169, %v61_v23  ;;  %v163_v27 = vand.u32 2139095040, %v621_v24  ;;  %v65_v29 = vor.u32 8388608, %v64_v25  ;;  %v160_v31 = vand.u32 2147483647, %v621_v24 }
  0x8c   :  { %v67_v28 = vadd.s32 1, %v499_v26  ;;  %v164_v30 = vshrl.u32 %v163_v27, 23  ;;  %v627_v36 = vshll.u32 %v65_v29, 8  ;;  %v167_v40 = vand.u32 8388607, %v160_v31 }
  0x8e   :  { %vm68_vm1 = vcmp.gt.s32.totalorder %v67_v28, 0  ;;  %v503_v33 = vadd.s32 4294967169, %v164_v30  ;;  %v168_v6 = vor.u32 8388608, %v167_v40 }
  0x8f   :  { %v69_v32 = vsel %vm68_vm1, %v67_v28, 0  ;;  %vm162_vm1 = vcmp.lt.s32.totalorder %v621_v24, 0 }
  0x90   :  { %v70_v34 = vshrl.u32 %v69_v32, 5  ;;  %v71_v35 = vand.u32 31, %v69_v32  ;;  %v170_v41 = vadd.s32 1, %v503_v33  ;;  %v208_v22 = vshll.u32 %v168_v6, 8 }
  0x92   :  { %v72_v37 = vsub.s32 32, %v71_v35  ;;  %v74_v39 = vshll.u32 %v570_v38, %v71_v35  ;;  %v77_v43 = vshll.u32 %v571_v42, %v71_v35  ;;  %v80_v45 = vshll.u32 %v572_v44, %v71_v35 }
  0x93   :  { %v83_v47 = vshll.u32 %v573_v46, %v71_v35  ;;  %v86_v49 = vshll.u32 %v574_v48, %v71_v35  ;;  %vm89_vm2 = vcmp.lt.s32.totalorder %v70_v34, 1  ;;  %vm91_vm3 = vcmp.lt.s32.totalorder %v70_v34, 3 }
  0x94   :  { %v75_v50 = vshrl.u32 %v571_v42, %v72_v37  ;;  %v78_v51 = vshrl.u32 %v572_v44, %v72_v37  ;;  %v81_v52 = vshrl.u32 %v573_v46, %v72_v37  ;;  %v73_v53 = vshrl.u32 %v570_v38, %v72_v37 }
  0x95   :  { %v84_v54 = vshrl.u32 %v574_v48, %v72_v37  ;;  %v87_v56 = vshrl.u32 %v575_v55, %v72_v37  ;;  %vm171_vm4 = vcmp.gt.s32.totalorder %v170_v41, 0  ;;  %vm92_vm5 = vcmp.lt.s32.totalorder %v70_v34, 4 }
  0x96   :  { %v76_v57 = vor.u32 %v75_v50, %v74_v39  ;;  %v79_v58 = vor.u32 %v78_v51, %v77_v43  ;;  %v82_v59 = vor.u32 %v81_v52, %v80_v45  ;;  %v172_v62 = vsel %vm171_vm4, %v170_v41, 0 }
  0x97   :  { %v85_v60 = vor.u32 %v84_v54, %v83_v47  ;;  %v88_v61 = vor.u32 %v87_v56, %v86_v49  ;;  %vm90_vm6 = vcmp.lt.s32.totalorder %v70_v34, 2  ;;  %v174_v10 = vand.u32 31, %v172_v62 }
  0x98   :  { %v93_v63 = vsel %vm89_vm2, %v73_v53, %v76_v57  ;;  %v94_v0 = vsel %vm92_vm5, %v82_v59, 2102212464  ;;  %v97_v1 = vsel %vm89_vm2, %v76_v57, %v79_v58  ;;  %v101_v2 = vsel %vm89_vm2, %v79_v58, %v82_v59 }
  0x99   :  { %v95_v3 = vsel %vm91_vm3, %v79_v58, %v94_v0  ;;  %v98_v4 = vsel %vm92_vm5, %v85_v60, 920167782  ;;  %v102_v5 = vsel %vm92_vm5, %v88_v61, 1326507024  ;;  %v173_v20 = vshrl.u32 %v172_v62, 5 }
  0x9a   :  { %v99_v7 = vsel %vm91_vm3, %v82_v59, %v98_v4  ;;  %v103_v9 = vsel %vm91_vm3, %v85_v60, %v102_v5  ;;  %v96_v11 = vsel %vm90_vm6, %v93_v63, %v95_v3  ;;  %v175_v21 = vsub.s32 32, %v174_v10 }
  0x9b   :  { %v100_v12 = vsel %vm90_vm6, %v97_v1, %v99_v7  ;;  %v104_v13 = vsel %vm90_vm6, %v101_v2, %v103_v9  ;;  %v112_v23 = vmul.u32 %v627_v36, %v96_v11  ;;  %v177_v25 = vshll.u32 %v570_v38, %v174_v10 }
  0x9c   :  { %v640_v14 = vmul.u32.u64.low %v627_v36, %v104_v13  ;;  %v641_v15 = vmul.u32.u64.high %v627_v36, %v104_v13, %v640_v14  ;;  %v644_v16 = vmul.u32.u64.low %v627_v36, %v100_v12  ;;  %v645_v19 = vmul.u32.u64.high %v627_v36, %v100_v12, %v644_v16 }
  0x9d   :  { %v180_v26 = vshll.u32 %v571_v42, %v174_v10  ;;  %v183_v27 = vshll.u32 %v572_v44, %v174_v10  ;;  %v178_v28 = vshrl.u32 %v571_v42, %v175_v21  ;;  %v181_v29 = vshrl.u32 %v572_v44, %v175_v21 }
  0x9e   :  { %v184_v30 = vshrl.u32 %v573_v46, %v175_v21  ;;  %v186_v32 = vshll.u32 %v573_v46, %v174_v10  ;;  %vm114_vm7 = vc.u32 %v641_v15, %v644_v16  ;;  %v115_v33 = vadd.s32 1, %v645_v19 }
  0x9f   :  { %v187_v34 = vshrl.u32 %v574_v48, %v175_v21  ;;  %v189_v35 = vshll.u32 %v574_v48, %v174_v10  ;;  %v179_v37 = vor.u32 %v178_v28, %v177_v25  ;;  %v182_v39 = vor.u32 %v181_v29, %v180_v26 }
  0xa0   :  { %v185_v40 = vor.u32 %v184_v30, %v183_v27  ;;  %v190_v41 = vshrl.u32 %v575_v55, %v175_v21  ;;  %v116_v36 = vsel %vm114_vm7, %v115_v33, %v645_v19  ;;  %vm192_vm8 = vcmp.lt.s32.totalorder %v173_v20, 1 }
  0xa1   :  { %v188_v43 = vor.u32 %v187_v34, %v186_v32  ;;  %vm195_vm9 = vcmp.lt.s32.totalorder %v173_v20, 4  ;;  %v117_v42 = vadd.s32 %v116_v36, %v112_v23  ;;  %vm194_vm10 = vcmp.lt.s32.totalorder %v173_v20, 3 }
  0xa2   :  { %v191_v44 = vor.u32 %v190_v41, %v189_v35  ;;  %v197_v45 = vsel %vm195_vm9, %v185_v40, 2102212464  ;;  %v176_v46 = vshrl.u32 %v570_v38, %v175_v21  ;;  %v200_v47 = vsel %vm192_vm8, %v179_v37, %v182_v39 }
  0xa3   :  { %v201_v49 = vsel %vm195_vm9, %v188_v43, 920167782  ;;  %v204_v50 = vsel %vm192_vm8, %v182_v39, %v185_v40  ;;  %v118_v51 = vadd.s32 536870912, %v117_v42  ;;  %vm193_vm11 = vcmp.lt.s32.totalorder %v173_v20, 2 }
  0xa4   :  { %v202_v48 = vsel %vm194_vm10, %v185_v40, %v201_v49  ;;  %v205_v52 = vsel %vm195_vm9, %v191_v44, 1326507024  ;;  %v196_v53 = vsel %vm192_vm8, %v176_v46, %v179_v37  ;;  %v198_v54 = vsel %vm194_vm10, %v182_v39, %v197_v45 }
  0xa5   :  { %v203_v55 = vsel %vm193_vm11, %v200_v47, %v202_v48  ;;  %v206_v56 = vsel %vm194_vm10, %v188_v43, %v205_v52  ;;  %v119_v57 = vshrl.u32 %v118_v51, 30  ;;  %v199_v63 = vsel %vm193_vm11, %v196_v53, %v198_v54 }
  0xa6   :  { %v207_v58 = vsel %vm193_vm11, %v204_v50, %v206_v56  ;;  %v655_v59 = vmul.u32.u64.low %v208_v22, %v203_v55  ;;  %v656_v60 = vmul.u32.u64.high %v208_v22, %v203_v55, %v655_v59  ;;  %v215_v2 = vmul.u32 %v208_v22, %v199_v63 }
  0xa7   :  { %v658_v61 = vmul.u32.u64.low %v208_v22, %v207_v58  ;;  %v659_v62 = vmul.u32.u64.high %v208_v22, %v207_v58, %v658_v61  ;;  %v120_v38 = vshll.u32 %v119_v57, 30  ;;  %v113_v19 = vadd.s32 %v644_v16, %v641_v15 }
  0xa8   :  { %v218_v1 = vadd.s32 1, %v656_v60  ;;  %v143_v39 = vsub.s32 4, %v119_v57  ;;  %v25_v58 = vand.u32 1, %v612_v8  ;;  %vm161_vm2 = vcmp.le.f32.partialorder %v160_v31, 0.7853982 }
  0xa9   :  { %v121_v0 = vsub.s32 %v117_v42, %v120_v38  ;;  %vm217_vm12 = vc.u32 %v659_v62, %v655_v59  ;;  %v216_v15 = vadd.s32 %v655_v59, %v659_v62  ;;  %vm149_vm10 = vweird.f32 %v616_v17 }
  0xaa   :  { %v219_v4 = vsel %vm217_vm12, %v218_v1, %v656_v60  ;;  %v144_v46 = vsel %vm59_vm15, %v143_v39, %v119_v57  ;;  %vm676_vm3 = vcmp.eq.s32.totalorder %v25_v58, 1  ;;  %vm479_vm11 = vcmask 261120  }
  0xab   :  { %v123_v3 = vsub.s32 0, %v121_v0  ;;  %v220_v5 = vadd.s32 %v219_v4, %v215_v2  ;;  %v146_v51 = vsel %vm58_vm0, 0, %v144_v46 }
  0xac   :  { %v356_v54 = vadd.s32 3, %v146_v51  ;;  %v150_v59 = vand.u32 3, %v146_v51 }
  0xad   :  { %v500_v6 = vmin.u32 %v123_v3, %v121_v0  ;;  %v221_v7 = vadd.s32 536870912, %v220_v5 }
  0xae   :  { %v357_v18 = vand.u32 3, %v356_v54  ;;  %vm155_vm4 = vcmp.eq.s32.totalorder %v150_v59, 2  ;;  %vm152_vm6 = vcmp.eq.s32.totalorder %v150_v59, 0  ;;  %vm151_vm8 = vcmp.lt.s32.totalorder %v150_v59, 2 }
  0xaf   :  { %v125_v9 = vclz %v500_v6  ;;  %v222_v10 = vshrl.u32 %v221_v7, 30 }
  0xb0   :  { %vm362_vm5 = vcmp.eq.s32.totalorder %v357_v18, 2  ;;  %vm359_vm7 = vcmp.eq.s32.totalorder %v357_v18, 0  ;;  %vm358_vm9 = vcmp.lt.s32.totalorder %v357_v18, 2 }
  0xb1   :  { %v501_v11 = vadd.s32 4294967294, %v125_v9  ;;  %v223_v12 = vshll.u32 %v222_v10, 30  ;;  %v246_v56 = vsub.s32 4, %v222_v10 }
  0xb3   :  { %vm502_vm13 = vcmp.lt.s32.totalorder %v501_v11, 0  ;;  %v224_v14 = vsub.s32 %v220_v5, %v223_v12  ;;  %v247_v61 = vsel %vm162_vm1, %v246_v56, %v222_v10  ;;  %v475_v10 = vld [vmem:[%s708_s2] sm:$0xff] }
  0xb4   :  { %v128_v13 = vsel %vm502_vm13, 0, %v501_v11  ;;  %v249_v2 = vsel %vm161_vm2, 0, %v247_v61 }
  0xb5   :  { %v129_v20 = vsub.s32 32, %v128_v13  ;;  %v133_v21 = vsub.s32 4294967266, %v128_v13  ;;  %v226_v22 = vsub.s32 0, %v224_v14  ;;  %v130_v23 = vshll.u32 %v121_v0, %v128_v13 }
  0xb6   :  { %v460_v9 = vadd.s32 3, %v249_v2 }
  0xb7   :  { %v131_v25 = vshrl.u32 %v113_v19, %v129_v20  ;;  %v134_v26 = vadd.s32 127, %v133_v21  ;;  %v504_v27 = vmin.u32 %v226_v22, %v224_v14  ;;  %v253_v19 = vand.u32 3, %v249_v2 }
  0xb8   :  { %v461_v20 = vand.u32 3, %v460_v9 }
  0xb9   :  { %v132_v28 = vor.u32 %v131_v25, %v130_v23  ;;  %v135_v29 = vshll.u32 %v134_v26, 23  ;;  %v228_v30 = vclz %v504_v27  ;;  %vm258_vm12 = vcmp.eq.s32.totalorder %v253_v19, 2 }
  0xba   :  { %vm466_vm13 = vcmp.eq.s32.totalorder %v461_v20, 2 }
  0xbb   :  { %v136_v32 = vor.u32 4788187, %v135_v29  ;;  %v505_v33 = vadd.s32 4294967294, %v228_v30  ;;  %v139_v35 = vcvt.s32.f32 %v132_v28 }
  0xbd   :  { %v137_v34 = vand.u32 2147483647, %v136_v32  ;;  %vm506_vm14 = vcmp.lt.s32.totalorder %v505_v33, 0  ;;  %v476_v32 = vld [vmem:[%s708_s2 + $0x8] sm:$0xff] }
  0xbe   :  { %v231_v40 = vsel %vm506_vm14, 0, %v505_v33  ;;  %vm255_vm14 = vcmp.eq.s32.totalorder %v253_v19, 0 }
  0xbf   :  { %v140_v37 = vmul.f32 %v139_v35, %v137_v34  ;;  %v232_v16 = vsub.s32 32, %v231_v40  ;;  %v236_v41 = vsub.s32 4294967266, %v231_v40  ;;  %v233_v43 = vshll.u32 %v224_v14, %v231_v40 }
  0xc1   :  { %v141_v36 = vxor.u32 2147483648, %v140_v37  ;;  %v234_v42 = vshrl.u32 %v216_v15, %v232_v16  ;;  %v237_v44 = vadd.s32 127, %v236_v41 }
  0xc3   :  { %v142_v45 = vsel %vm59_vm15, %v141_v36, %v140_v37  ;;  %v235_v49 = vor.u32 %v234_v42, %v233_v43  ;;  %v238_v50 = vshll.u32 %v237_v44, 23  ;;  %vm463_vm15 = vcmp.eq.s32.totalorder %v461_v20, 0 }
  0xc4   :  { %v145_v47 = vsel %vm58_vm0, %v616_v17, %v142_v45  ;;  %vm254_vm0 = vcmp.lt.s32.totalorder %v253_v19, 2 }
  0xc5   :  { %537 = vcosq.f32 %v145_v47  ;;  %v239_v48 = vor.u32 4788187, %v238_v50  ;;  %v242_v53 = vcvt.s32.f32 %v235_v49 }
  0xc6   :  { %539 = vsinq.f32 %v145_v47 }
  0xc7   :  { %v240_v52 = vand.u32 2147483647, %v239_v48 }
  0xc9   :  { %v243_v55 = vmul.f32 %v242_v53, %v240_v52 }
  0xcb   :  { %v244_v60 = vxor.u32 2147483648, %v243_v55 }
  0xcd   :  { %v245_v57 = vsel %vm162_vm1, %v244_v60, %v243_v55  ;;  %vm462_vm1 = vcmp.lt.s32.totalorder %v461_v20, 2 }
  0xce   :  { %v248_v38 = vsel %vm161_vm2, %v621_v24, %v245_v57  ;;  %vm252_vm2 = vweird.f32 %v621_v24 }
  0xcf   :  { %v538_v62 = vpop.eup %537  ;;  %541 = vcosq.f32 %v248_v38 }
  0xd0   :  { %v540_v63 = vpop.eup %539  ;;  %v156_v8 = vxor.u32 2147483648, %v538_v62  ;;  %543 = vsinq.f32 %v248_v38 }
  0xd1   :  { %v153_v1 = vxor.u32 2147483648, %v540_v63 }
  0xd2   :  { %v157_v3 = vsel %vm155_vm4, %v156_v8, %v540_v63  ;;  %v364_v31 = vsel %vm362_vm5, %v156_v8, %v540_v63 }
  0xd3   :  { %v154_v4 = vsel %vm152_vm6, %v538_v62, %v153_v1  ;;  %v361_v5 = vsel %vm359_vm7, %v538_v62, %v153_v1 }
  0xd4   :  { %v158_v6 = vsel %vm151_vm8, %v154_v4, %v157_v3  ;;  %v365_v7 = vsel %vm358_vm9, %v361_v5, %v364_v31 }
  0xd5   :  { %v159_v11 = vsel %vm149_vm10, nan, %v158_v6  ;;  %v366_v12 = vsel %vm149_vm10, nan, %v365_v7 }
  0xd6   :  { %v473_v13 = vsel %vm676_vm3, %v159_v11, %v366_v12 }
  0xd7   :  { %v477_v14 = vadd.f32 %v475_v10, %v473_v13 }
  0xd9   :  { %480 = vst.msk [vmem:[#allocation2] sm:$0xff] %vm479_vm11, %v477_v14  ;;  %v542_v21 = vpop.eup %541 }
  0xda   :  { %v544_v17 = vpop.eup %543  ;;  %v259_v22 = vxor.u32 2147483648, %v542_v21 }
  0xdb   :  { %v256_v23 = vxor.u32 2147483648, %v544_v17 }
  0xdc   :  { %v260_v25 = vsel %vm258_vm12, %v259_v22, %v544_v17  ;;  %v468_v26 = vsel %vm466_vm13, %v259_v22, %v544_v17 }
  0xdd   :  { %v257_v27 = vsel %vm255_vm14, %v542_v21, %v256_v23  ;;  %v465_v28 = vsel %vm463_vm15, %v542_v21, %v256_v23 }
  0xde   :  { %v261_v29 = vsel %vm254_vm0, %v257_v27, %v260_v25  ;;  %v469_v30 = vsel %vm462_vm1, %v465_v28, %v468_v26 }
  0xdf   :  { %v262_v33 = vsel %vm252_vm2, nan, %v261_v29  ;;  %v470_v34 = vsel %vm252_vm2, nan, %v469_v30 }
  0xe0   :  { %v474_v35 = vsel %vm676_vm3, %v262_v33, %v470_v34 }
  0xe1   :  { %v478_v37 = vadd.f32 %v476_v32, %v474_v35 }
  0xe3   :  { %481 = vst.msk [vmem:[#allocation2 + $0x8] sm:$0xff] %vm479_vm11, %v478_v37 }
  0xe4   :  { %556 = shalt.err (!%p553_p4)
}
  0xe5   :  { %s557_s26 = scalar_lea.hbm %s709_s3, 256 }
  0xe6   :  { %p558_p5 = scmp.ne.s32.totalorder %s709_s3, %s557_s26  ;;  %p561_p6 = scmp.lt.u32.totalorder %s557_s26, %s709_s3 }
  0xe8   :  { %p563_p7 = pnand %p561_p6, %p558_p5 }
  0xea   :  { %566 = shalt.err (!%p563_p7)
}
  0xeb   :  { %s577_s4 = smov 128   ;;  %s578_s5 = smov 8  }
  0xec   :  { %493 = dma.vmem_to_hbm [thread:$0]  %s488_s23, 256, %s709_s3, [#allocation3], %s577_s4, %s577_s4, %s578_s5  }
  0xed   :  { %567 = dma.done.wait [#allocation3], 256  }
  0xee   :  { %568 = vsyncadd [#allocation3], 4294967040 }
  0xef   :  { %497 = vsyncpa [#allocation3], 1 }

</bundles_post_ra>
